<compile_context>
chip_gen: v7x
topology: tpu7x:2x2x1
jax: 0.10.0
libtpu: 0.0.40
codegen_flags: <defaults>
</compile_context>

<pallas_src>
import functools

import jax
import jax.numpy as jnp
from jax.experimental import pallas as pl
from jax.experimental.pallas import tpu as pltpu

LRELU_SLOPE = 0.01
LANES = 128


def _lrelu(x):
    # max(x, a*x) == LeakyReLU for 0 < a < 1.  One vmul + one vmax.
    return jnp.maximum(x, LRELU_SLOPE * x)


def _round_up(x, m):
    return ((x + m - 1) // m) * m


def mlp_block_kernel(x_ref, c_ref, w0a_ref, w0b_ref, b0_ref, w1_ref, b1_ref,
                     o_ref):
    """One packed row-tile of the MLP block: 2x (linear + LeakyReLU) + residual.

    Activation refs are lane-dense packed: `pack` consecutive batch rows are
    folded into the 128-lane dimension; weights are the matching
    block-diagonal matrices, so plain matmuls act independently on each folded
    row.  MXU operands use the weights' dtype (f32 or bf16); accumulation and
    all VPU math (bias add, lrelu, residual) stay in f32.
    """
    mxu_dtype = w0a_ref.dtype
    x = x_ref[...]

    # Layer 0: inpt part + ctxt part + bias, then activation (f32 accumulate).
    h = jnp.dot(x.astype(mxu_dtype), w0a_ref[...],
                preferred_element_type=jnp.float32)
    h = h + jnp.dot(c_ref[...].astype(mxu_dtype), w0b_ref[...],
                    preferred_element_type=jnp.float32)
    h = _lrelu(h + b0_ref[...])

    # Layer 1.
    h = jnp.dot(h.astype(mxu_dtype), w1_ref[...],
                preferred_element_type=jnp.float32)
    h = _lrelu(h + b1_ref[...])

    # Residual add of the (un-concatenated) block input — same tile, no re-read.
    o_ref[...] = (h + x.astype(jnp.float32)).astype(o_ref.dtype)


def prepare_mlp_block_params(w0, b0, w1, b1, *, inpt_dim, mxu_dtype=jnp.float32):
    """One-time parameter prep (hoisted out of the forward hot path).

    w0: [inpt_dim + ctxt_dim, outp_dim]  (pre-transposed nn.Linear weight)
    w1: [outp_dim, outp_dim]
    Returns block-diagonalised weights (pack copies of each layer matrix on
    the diagonal) so one 128-lane matmul transforms `pack` batch rows at once,
    plus lane-tiled f32 biases.
    """
    outp_dim = w1.shape[-1]
    assert LANES % outp_dim == 0, "packed layout needs outp_dim to divide 128"
    pack = LANES // outp_dim
    eye = jnp.eye(pack, dtype=jnp.float32)
    w0a = jnp.kron(eye, w0[:inpt_dim].astype(jnp.float32)).astype(mxu_dtype)
    w0b = jnp.kron(eye, w0[inpt_dim:].astype(jnp.float32)).astype(mxu_dtype)
    w1b = jnp.kron(eye, w1.astype(jnp.float32)).astype(mxu_dtype)
    b0p = jnp.tile(b0.astype(jnp.float32), pack).reshape(1, LANES)
    b1p = jnp.tile(b1.astype(jnp.float32), pack).reshape(1, LANES)
    return (w0a, w0b, b0p, w1b, b1p)


@functools.partial(jax.jit, static_argnames=("tile_rows",))
def mlp_block_forward(inpt, ctxt, params, *, tile_rows=16384):
    """Pallas wrapper.

    inpt: [B, inpt_dim], ctxt: [B, ctxt_dim]
    params: output of prepare_mlp_block_params (weights may be f32 or bf16).
    For the full bandwidth win, pass inpt/ctxt already in bf16 (the kernel
    accumulates in f32 and writes an f32 output either way).
    """
    w0a, w0b, b0p, w1b, b1p = params
    B, inpt_dim = inpt.shape
    ctxt_dim = ctxt.shape[-1]
    assert LANES % inpt_dim == 0, "packed layout needs inpt_dim to divide 128"
    pack = LANES // inpt_dim                 # batch rows folded into lanes
    ctxt_lanes = pack * ctxt_dim
    assert w0b.shape[0] == ctxt_lanes, "params do not match ctxt_dim"

    # Pad the batch only to the packing alignment (32 rows), NOT to the tile
    # size.  The ragged tail tile is handled by a cdiv grid (rows never
    # interact and padded outputs are sliced off below).
    row_align = 8 * pack
    b_pad = _round_up(B, row_align)
    if b_pad != B:
        inpt = jnp.pad(inpt, ((0, b_pad - B), (0, 0)))
        ctxt = jnp.pad(ctxt, ((0, b_pad - B), (0, 0)))

    # Free row-major re-views into lane-dense packed slabs (no data movement).
    n_rows_packed = b_pad // pack
    x_packed = inpt.reshape(n_rows_packed, LANES)
    c_packed = ctxt.reshape(n_rows_packed, ctxt_lanes)

    # Tile selection:
    #  * as large as requested (amortise ~0.35 us per-step overhead),
    #  * but >= 2 grid steps whenever possible so ("parallel",) shards the
    #    batch across both v7x TensorCores,
    #  * default 16384 rows keeps the double-buffered working set ~10 MiB —
    #    well inside the 32 MiB scoped-VMEM default on v5e/v6e/v7x.
    tile_rows = _round_up(max(int(tile_rows), row_align), row_align)
    if b_pad > row_align:
        tile_rows = min(tile_rows, _round_up(b_pad // 2, row_align))
    tile_rows = min(tile_rows, b_pad)
    rows_p = tile_rows // pack
    grid = (pl.cdiv(n_rows_packed, rows_p),)

    out_packed = pl.pallas_call(
        mlp_block_kernel,
        out_shape=jax.ShapeDtypeStruct((n_rows_packed, LANES), jnp.float32),
        grid_spec=pltpu.PrefetchScalarGridSpec(
            num_scalar_prefetch=0,
            grid=grid,
            in_specs=[
                pl.BlockSpec((rows_p, LANES), lambda i: (i, 0)),       # inpt tile
                pl.BlockSpec((rows_p, ctxt_lanes), lambda i: (i, 0)),  # ctxt tile
                # Constant-index blocks below stay resident; the pipeline does
                # not re-issue their DMAs when the block index is unchanged.
                pl.BlockSpec((LANES, LANES), lambda i: (0, 0)),        # W0a
                pl.BlockSpec((ctxt_lanes, LANES), lambda i: (0, 0)),   # W0b
                pl.BlockSpec((1, LANES), lambda i: (0, 0)),            # b0
                pl.BlockSpec((LANES, LANES), lambda i: (0, 0)),        # W1
                pl.BlockSpec((1, LANES), lambda i: (0, 0)),            # b1
            ],
            out_specs=pl.BlockSpec((rows_p, LANES), lambda i: (i, 0)),
        ),
        compiler_params=pltpu.CompilerParams(
            dimension_semantics=("parallel",)),
    )(x_packed, c_packed, w0a, w0b, b0p, w1b, b1p)

    # Free re-view back to [B, outp_dim]; drop padded rows.
    return out_packed.reshape(b_pad, inpt_dim)[:B]


def reference_forward(inpt, ctxt, w0, b0, w1, b1):
    xc = jnp.concatenate([inpt, ctxt], axis=-1)
    h = xc @ w0 + b0
    h = jnp.where(h > 0, h, LRELU_SLOPE * h)
    h = h @ w1 + b1
    h = jnp.where(h > 0, h, LRELU_SLOPE * h)
    return h + inpt


if __name__ == "__main__":
    inpt_dim, outp_dim, ctxt_dim = 32, 32, 8
    batch = 50   # not a multiple of 32: exercises alignment pad + ragged grid

    key = jax.random.PRNGKey(0)
    k_x, k_c, k_w0, k_b0, k_w1, k_b1 = jax.random.split(key, 6)

    inpt = jax.random.normal(k_x, (batch, inpt_dim), dtype=jnp.float32)
    ctxt = jax.random.normal(k_c, (batch, ctxt_dim), dtype=jnp.float32)

    # Deterministic parameter init (uniform, PyTorch-Linear-style bounds),
    # stored as [in_features, out_features] (i.e. W^T relative to nn.Linear).
    in0 = inpt_dim + ctxt_dim
    bound0 = 1.0 / jnp.sqrt(in0)
    bound1 = 1.0 / jnp.sqrt(outp_dim)
    w0 = jax.random.uniform(k_w0, (in0, outp_dim), jnp.float32, -bound0, bound0)
    b0 = jax.random.uniform(k_b0, (outp_dim,), jnp.float32, -bound0, bound0)
    w1 = jax.random.uniform(k_w1, (outp_dim, outp_dim), jnp.float32, -bound1,
                            bound1)
    b1 = jax.random.uniform(k_b1, (outp_dim,), jnp.float32, -bound1, bound1)

    ref = reference_forward(inpt, ctxt, w0, b0, w1, b1)

    # --- f32 path: bit-accurate against the reference. ----------------------
    params_f32 = prepare_mlp_block_params(w0, b0, w1, b1, inpt_dim=inpt_dim,
                                          mxu_dtype=jnp.float32)
    out_f32 = jax.block_until_ready(mlp_block_forward(inpt, ctxt, params_f32))
    assert out_f32.shape == (batch, outp_dim)
    assert jnp.allclose(out_f32, ref, atol=2e-5, rtol=2e-5), \
        "f32 path mismatch vs reference"

    # --- bf16-storage / bf16-MXU path: halves HBM bytes moved. --------------
    # (In production the caller would hand bf16 activations directly; the
    #  wrapper-side casts here are only for the self-contained demo.)
    params_bf16 = prepare_mlp_block_params(w0, b0, w1, b1, inpt_dim=inpt_dim,
                                           mxu_dtype=jnp.bfloat16)
    out_bf16 = jax.block_until_ready(
        mlp_block_forward(inpt.astype(jnp.bfloat16),
                          ctxt.astype(jnp.bfloat16), params_bf16))
    assert out_bf16.shape == (batch, outp_dim)
    assert out_bf16.dtype == jnp.float32
    assert jnp.allclose(out_bf16, ref, atol=5e-2, rtol=5e-2), \
        "bf16 path mismatch vs reference (beyond bf16 rounding tolerance)"

    print("KERNEL_OK")
</pallas_src>

<mosaic_0001>
module attributes {stable_mosaic.version = 11 : i64} {
  func.func @mlp_block_kernel(%arg0: i32, %arg1: memref<8x128xf32, #tpu.memory_space<vmem>>, %arg2: memref<8x32xf32, #tpu.memory_space<vmem>>, %arg3: memref<128x128xf32, #tpu.memory_space<vmem>>, %arg4: memref<32x128xf32, #tpu.memory_space<vmem>>, %arg5: memref<1x128xf32, #tpu.memory_space<vmem>>, %arg6: memref<128x128xf32, #tpu.memory_space<vmem>>, %arg7: memref<1x128xf32, #tpu.memory_space<vmem>>, %arg8: memref<8x128xf32, #tpu.memory_space<vmem>>) attributes {dimension_semantics = [#tpu.dimension_semantics<parallel>], iteration_bounds = array<i64: 2>, scalar_prefetch = 0 : i64, scratch_operands = 0 : i64, tpu.core_type = #tpu.core_type<tc>, window_params = [{transform_indices = @transform_0, window_bounds = array<i64: 8, 128>}, {transform_indices = @transform_1, window_bounds = array<i64: 8, 32>}, {pipeline_mode = #tpu.pipeline_mode<synchronous>, transform_indices = @transform_2, window_bounds = array<i64: 128, 128>}, {pipeline_mode = #tpu.pipeline_mode<synchronous>, transform_indices = @transform_3, window_bounds = array<i64: 32, 128>}, {pipeline_mode = #tpu.pipeline_mode<synchronous>, transform_indices = @transform_4, window_bounds = array<i64: 1, 128>}, {pipeline_mode = #tpu.pipeline_mode<synchronous>, transform_indices = @transform_5, window_bounds = array<i64: 128, 128>}, {pipeline_mode = #tpu.pipeline_mode<synchronous>, transform_indices = @transform_6, window_bounds = array<i64: 1, 128>}, {transform_indices = @transform_7, window_bounds = array<i64: 8, 128>}]} {
    %c0 = arith.constant 0 : index
    %c0_0 = arith.constant 0 : index
    %0 = vector.load %arg1[%c0, %c0_0] : memref<8x128xf32, #tpu.memory_space<vmem>>, vector<8x128xf32>
    %c0_1 = arith.constant 0 : index
    %c0_2 = arith.constant 0 : index
    %1 = vector.load %arg3[%c0_1, %c0_2] : memref<128x128xf32, #tpu.memory_space<vmem>>, vector<128x128xf32>
    %cst = arith.constant dense<0.000000e+00> : vector<8x128xf32>
    %2 = tpu.matmul %0, %1, %cst {dimension_numbers = #tpu.dot_dimension_numbers<[1], [0], [0], [1], [0, 0, 1, 1], [], []>} : vector<8x128xf32>, vector<128x128xf32>, vector<8x128xf32> -> vector<8x128xf32>
    %c0_3 = arith.constant 0 : index
    %c0_4 = arith.constant 0 : index
    %3 = vector.load %arg2[%c0_3, %c0_4] : memref<8x32xf32, #tpu.memory_space<vmem>>, vector<8x32xf32>
    %c0_5 = arith.constant 0 : index
    %c0_6 = arith.constant 0 : index
    %4 = vector.load %arg4[%c0_5, %c0_6] : memref<32x128xf32, #tpu.memory_space<vmem>>, vector<32x128xf32>
    %cst_7 = arith.constant dense<0.000000e+00> : vector<8x128xf32>
    %5 = tpu.matmul %3, %4, %cst_7 {dimension_numbers = #tpu.dot_dimension_numbers<[1], [0], [0], [1], [0, 0, 1, 1], [], []>} : vector<8x32xf32>, vector<32x128xf32>, vector<8x128xf32> -> vector<8x128xf32>
    %6 = arith.addf %2, %5 : vector<8x128xf32>
    %c0_8 = arith.constant 0 : index
    %c0_9 = arith.constant 0 : index
    %7 = vector.load %arg5[%c0_8, %c0_9] : memref<1x128xf32, #tpu.memory_space<vmem>>, vector<1x128xf32>
    %8 = vector.broadcast %7 : vector<1x128xf32> to vector<8x128xf32>
    %9 = arith.addf %6, %8 : vector<8x128xf32>
    %cst_10 = arith.constant 0.00999999977 : f32
    %10 = vector.broadcast %cst_10 : f32 to vector<8x128xf32>
    %11 = arith.mulf %10, %9 : vector<8x128xf32>
    %12 = arith.maximumf %9, %11 : vector<8x128xf32>
    %c0_11 = arith.constant 0 : index
    %c0_12 = arith.constant 0 : index
    %13 = vector.load %arg6[%c0_11, %c0_12] : memref<128x128xf32, #tpu.memory_space<vmem>>, vector<128x128xf32>
    %cst_13 = arith.constant dense<0.000000e+00> : vector<8x128xf32>
    %14 = tpu.matmul %12, %13, %cst_13 {dimension_numbers = #tpu.dot_dimension_numbers<[1], [0], [0], [1], [0, 0, 1, 1], [], []>} : vector<8x128xf32>, vector<128x128xf32>, vector<8x128xf32> -> vector<8x128xf32>
    %c0_14 = arith.constant 0 : index
    %c0_15 = arith.constant 0 : index
    %15 = vector.load %arg7[%c0_14, %c0_15] : memref<1x128xf32, #tpu.memory_space<vmem>>, vector<1x128xf32>
    %16 = vector.broadcast %15 : vector<1x128xf32> to vector<8x128xf32>
    %17 = arith.addf %14, %16 : vector<8x128xf32>
    %cst_16 = arith.constant 0.00999999977 : f32
    %18 = vector.broadcast %cst_16 : f32 to vector<8x128xf32>
    %19 = arith.mulf %18, %17 : vector<8x128xf32>
    %20 = arith.maximumf %17, %19 : vector<8x128xf32>
    %21 = arith.addf %20, %0 : vector<8x128xf32>
    %c0_17 = arith.constant 0 : index
    %c0_18 = arith.constant 0 : index
    %22 = vector.load %arg8[%c0_17, %c0_18] : memref<8x128xf32, #tpu.memory_space<vmem>>, vector<8x128xf32>
    tpu.vector_store %arg8[%c0_17, %c0_18], %21 {strides = array<i32>} : memref<8x128xf32, #tpu.memory_space<vmem>>, vector<8x128xf32>,
    return
  }
  func.func @transform_0(%arg0: i32) -> (i32, i32) {
    %c0_i32 = arith.constant 0 : i32
    %c0_i32_0 = arith.constant 0 : i32
    return %arg0, %c0_i32 : i32, i32
  }
  func.func @transform_1(%arg0: i32) -> (i32, i32) {
    %c0_i32 = arith.constant 0 : i32
    %c0_i32_0 = arith.constant 0 : i32
    return %arg0, %c0_i32 : i32, i32
  }
  func.func @transform_2(%arg0: i32) -> (i32, i32) {
    %c0_i32 = arith.constant 0 : i32
    %c0_i32_0 = arith.constant 0 : i32
    %c0_i32_1 = arith.constant 0 : i32
    return %c0_i32, %c0_i32_0 : i32, i32
  }
  func.func @transform_3(%arg0: i32) -> (i32, i32) {
    %c0_i32 = arith.constant 0 : i32
    %c0_i32_0 = arith.constant 0 : i32
    %c0_i32_1 = arith.constant 0 : i32
    return %c0_i32, %c0_i32_0 : i32, i32
  }
  func.func @transform_4(%arg0: i32) -> (i32, i32) {
    %c0_i32 = arith.constant 0 : i32
    %c0_i32_0 = arith.constant 0 : i32
    %c0_i32_1 = arith.constant 0 : i32
    return %c0_i32, %c0_i32_0 : i32, i32
  }
  func.func @transform_5(%arg0: i32) -> (i32, i32) {
    %c0_i32 = arith.constant 0 : i32
    %c0_i32_0 = arith.constant 0 : i32
    %c0_i32_1 = arith.constant 0 : i32
    return %c0_i32, %c0_i32_0 : i32, i32
  }
  func.func @transform_6(%arg0: i32) -> (i32, i32) {
    %c0_i32 = arith.constant 0 : i32
    %c0_i32_0 = arith.constant 0 : i32
    %c0_i32_1 = arith.constant 0 : i32
    return %c0_i32, %c0_i32_0 : i32, i32
  }
  func.func @transform_7(%arg0: i32) -> (i32, i32) {
    %c0_i32 = arith.constant 0 : i32
    %c0_i32_0 = arith.constant 0 : i32
    return %arg0, %c0_i32 : i32, i32
  }
}

</mosaic_0001>

<bundles_post_ra>
// kernel: mlp_block_forward.1
= control target key start
LH: loop header
LB: loop body
LE: loop exit
PB: predicated region body
PF: predicated region fallthrough
CT: control target
= control target key end

     0   :  { %s878_s24 = smov 0   ;;  %s1038_s0 = inlined_call_operand.vmem [shape: f32[16,128], index: 0, kind: input, shape index: {}]   ;;  %s1039_s1 = inlined_call_operand.vmem [shape: f32[16,32], index: 1, kind: input, shape index: {}]   ;;  %s1040_s2 = inlined_call_operand.vmem [shape: f32[128,128], index: 2, kind: input, shape index: {}]   ;;  %s1041_s3 = inlined_call_operand.vmem [shape: f32[32,128], index: 3, kind: input, shape index: {}]   ;;  %s1042_s4 = inlined_call_operand.vmem [shape: f32[1,128], index: 4, kind: input, shape index: {}]   ;;  %s1043_s5 = inlined_call_operand.vmem [shape: f32[128,128], index: 5, kind: input, shape index: {}]   ;;  %s1044_s6 = inlined_call_operand.vmem [shape: f32[1,128], index: 6, kind: input, shape index: {}]   ;;  %s1045_s7 = inlined_call_operand.vmem [shape: f32[16,128], index: 7, kind: output, shape index: {}]  }
   0x1 LB: > { %s629_s25 = sadd.s32 4294967295, %s833_s24   ;;  %p633_p0 = scmp.ge.s32.totalorder %s833_s24, 1  ;;  %s833_s24 = sphi %s878_s24, %s17_s24  }
   0x2   : > { %p245_p1 = scmp.lt.s32.totalorder %s833_s24, 3 }
   0x4   : > { %p246_p2 = pnand %p633_p0, %p245_p1 }
   0x5   : > { %v292_v0 = vld [vmem:[%s1040_s2] sm:$0xff] (!%p246_p2)  ;;  %v293_v1 = vld [vmem:[%s1040_s2 + $0x8] sm:$0xff] (!%p246_p2)  ;;  %v294_v2 = vld [vmem:[%s1040_s2 + $0x10] sm:$0xff] (!%p246_p2)  ;;  %v835_v3 = vmov (!%p246_p2), 0.0|0.0   ;;  %p279_p3 = scmp.lt.s32.totalorder (!%p246_p2), %s629_s25, 1  ;;  %vm836_vm0 = vmmov (!%p246_p2), 0  }
   0x6   : > { %249 = sbr.rel (%p246_p2) target bundleno = 480 (0x1e0), region = 48  ;;  %768 = vmatprep.subr.bf16.mxu1 (!%p246_p2), %v835_v3  ;;  %v769_v4 = vpack.c.bf16 (!%p246_p2), %v293_v1, %v292_v0  ;;  %v295_v5 = vld [vmem:[%s1040_s2 + $0x18] sm:$0xff] (!%p246_p2)  ;;  %762 = vmatprep.subr.bf16.mxu0 (!%p246_p2), %v835_v3  ;;  %v837_v6 = vmov (!%p246_p2), 0.0   ;;  %v296_v8 = vld [vmem:[%s1040_s2 + $0x20] sm:$0xff] (!%p246_p2)  ;;  %v297_v9 = vld [vmem:[%s1040_s2 + $0x28] sm:$0xff] (!%p246_p2)  ;;  %vm313_vm1 = vcmask (!%p246_p2), 261120  }
   0x7   : > { %689 = vmatprep.mubr.msk.f32.mxu0 (!%p246_p2), %vm836_vm0, %v837_v6  ;;  %724 = vmatprep.mubr.msk.f32.mxu1 (!%p246_p2), %vm836_vm0, %v837_v6  ;;  %v772_v7 = vpack.c.bf16 (!%p246_p2), %v295_v5, %v294_v2  ;;  %v309_v10 = vld [vmem:[%s1041_s3] sm:$0xff] (!%p246_p2)  ;;  %v310_v11 = vld [vmem:[%s1041_s3 + $0x8] sm:$0xff] (!%p246_p2)  ;;  %v311_v13 = vld [vmem:[%s1041_s3 + $0x10] sm:$0xff] (!%p246_p2)  ;;  %v775_v15 = vpack.c.bf16 (!%p246_p2), %v297_v9, %v296_v8 }
   0x8   : > { %770 = vmatpush3.bf16.msra.mxu1 (!%p246_p2), %v769_v4  ;;  %v763_v12 = vpack.c.bf16 (!%p246_p2), %v310_v11, %v309_v10  ;;  %v312_v14 = vld [vmem:[%s1041_s3 + $0x18] sm:$0xff] (!%p246_p2)  ;;  %v298_v16 = vld [vmem:[%s1040_s2 + $0x30] sm:$0xff] (!%p246_p2)  ;;  %v467_v19 = vld [vmem:[%s1043_s5] sm:$0xff] (!%p246_p2) }
   0x9   : > { %771 = vmatprep.subr.bf16.mxu1 (!%p246_p2), %v835_v3  ;;  %v766_v17 = vpack.c.bf16 (!%p246_p2), %v312_v14, %v311_v13  ;;  %v299_v18 = vld [vmem:[%s1040_s2 + $0x38] sm:$0xff] (!%p246_p2)  ;;  %v468_v20 = vld [vmem:[%s1043_s5 + $0x8] sm:$0xff] (!%p246_p2)  ;;  %v300_v22 = vld [vmem:[%s1040_s2 + $0x40] sm:$0xff] (!%p246_p2) }
   0xa   : > { %764 = vmatpush3.bf16.msra.mxu0 (!%p246_p2), %v763_v12  ;;  %v778_v21 = vpack.c.bf16 (!%p246_p2), %v299_v18, %v298_v16  ;;  %v793_v24 = vpack.c.bf16 (!%p246_p2), %v468_v20, %v467_v19  ;;  %v301_v25 = vld [vmem:[%s1040_s2 + $0x48] sm:$0xff] (!%p246_p2)  ;;  %v469_v26 = vld [vmem:[%s1043_s5 + $0x10] sm:$0xff] (!%p246_p2)  ;;  %v470_v27 = vld [vmem:[%s1043_s5 + $0x18] sm:$0xff] (!%p246_p2) }
   0xb   : > { %765 = vmatprep.subr.bf16.mxu0 (!%p246_p2), %v835_v3  ;;  %v781_v28 = vpack.c.bf16 (!%p246_p2), %v301_v25, %v300_v22  ;;  %v302_v29 = vld [vmem:[%s1040_s2 + $0x50] sm:$0xff] (!%p246_p2)  ;;  %v796_v30 = vpack.c.bf16 (!%p246_p2), %v470_v27, %v469_v26  ;;  %v303_v31 = vld [vmem:[%s1040_s2 + $0x58] sm:$0xff] (!%p246_p2)  ;;  %v471_v32 = vld [vmem:[%s1043_s5 + $0x20] sm:$0xff] (!%p246_p2) }
   0xc   : > { %773 = vmatpush3.bf16.msra.mxu1 (!%p246_p2), %v772_v7  ;;  %v472_v33 = vld [vmem:[%s1043_s5 + $0x28] sm:$0xff] (!%p246_p2)  ;;  %v784_v34 = vpack.c.bf16 (!%p246_p2), %v303_v31, %v302_v29  ;;  %v304_v35 = vld [vmem:[%s1040_s2 + $0x60] sm:$0xff] (!%p246_p2)  ;;  %v473_v38 = vld [vmem:[%s1043_s5 + $0x30] sm:$0xff] (!%p246_p2) }
   0xd   : > { %s1047_s25 = smov (!%p279_p3, %s629_s25), 1  ;;  %774 = vmatprep.subr.bf16.mxu1 %v835_v3  ;;  %v799_v36 = vpack.c.bf16 %v472_v33, %v471_v32  ;;  %v305_v37 = vld [vmem:[%s1040_s2 + $0x68] sm:$0xff]  ;;  %v474_v39 = vld [vmem:[%s1043_s5 + $0x38] sm:$0xff]  ;;  %v306_v41 = vld [vmem:[%s1040_s2 + $0x70] sm:$0xff] }
   0xe   : > { %s921_s23 = sshll.u32 %s1047_s25, 3  ;;  %767 = vmatpush3.bf16.msra.mxu0 %v766_v17  ;;  %v787_v40 = vpack.c.bf16 %v305_v37, %v304_v35  ;;  %v802_v42 = vpack.c.bf16 %v474_v39, %v473_v38  ;;  %v307_v43 = vld [vmem:[%s1040_s2 + $0x78] sm:$0xff]  ;;  %v475_v44 = vld [vmem:[%s1043_s5 + $0x40] sm:$0xff]  ;;  %v476_v45 = vld [vmem:[%s1043_s5 + $0x48] sm:$0xff] }
   0xf   : > { %s286_s8 = scalar_lea.vmem %s1039_s1, %s921_s23  ;;  %792 = vmatprep.subr.bf16.mxu0 %v835_v3  ;;  %v790_v46 = vpack.c.bf16 %v307_v43, %v306_v41  ;;  %v805_v47 = vpack.c.bf16 %v476_v45, %v475_v44  ;;  %s282_s29 = scalar_lea.vmem %s1038_s0, %s921_s23  ;;  %v477_v48 = vld [vmem:[%s1043_s5 + $0x50] sm:$0xff]  ;;  %v478_v49 = vld [vmem:[%s1043_s5 + $0x58] sm:$0xff]  ;;  %v479_v52 = vld [vmem:[%s1043_s5 + $0x60] sm:$0xff] }
  0x10   : > { %776 = vmatpush3.bf16.msra.mxu1 %v775_v15  ;;  %v308_v23 = vld [vmem:[%s286_s8] sm:$0xff]  ;;  %v808_v51 = vpack.c.bf16 %v478_v49, %v477_v48  ;;  %v480_v53 = vld [vmem:[%s1043_s5 + $0x68] sm:$0xff]  ;;  %v481_v55 = vld [vmem:[%s1043_s5 + $0x70] sm:$0xff]  ;;  %s290_s27 = scalar_lea.vmem %s1045_s7, %s921_s23 }
  0x11   : > { %777 = vmatprep.subr.bf16.mxu1 %v835_v3  ;;  %690 = vmatmul.mubr.msk.f32.vlgmr.msra.gmra.mrb[0].mxu0 %vm313_vm1, %v308_v23  ;;  %v291_v50 = vld [vmem:[%s282_s29] sm:$0xff]  ;;  %v811_v54 = vpack.c.bf16 %v480_v53, %v479_v52  ;;  %v482_v56 = vld [vmem:[%s1043_s5 + $0x78] sm:$0xff] }
  0x12   : > { %794 = vmatpush3.bf16.msra.mxu0 %v793_v24  ;;  %759 = vmatprep.mubr.msk.f32.mxu0 %vm836_vm0, %v837_v6  ;;  %v814_v57 = vpack.c.bf16 %v482_v56, %v481_v55  ;;  %v638_v61 = vld [vmem:[%s1042_s4] ss:$0 sm:$0xff] }
  0x13   : > { %795 = vmatprep.subr.bf16.mxu0 %v835_v3 }
  0x14   : > { %779 = vmatpush3.bf16.msra.mxu1 %v778_v21 }
  0x15   : > { %780 = vmatprep.subr.bf16.mxu1 %v835_v3 }
  0x16   : > { %797 = vmatpush3.bf16.msra.mxu0 %v796_v30 }
  0x17   : > { %798 = vmatprep.subr.bf16.mxu0 %v835_v3 }
  0x18   : > { %782 = vmatpush3.bf16.msra.mxu1 %v781_v28 }
  0x19   : > { %783 = vmatprep.subr.bf16.mxu1 %v835_v3 }
  0x1a   : > { %800 = vmatpush3.bf16.msra.mxu0 %v799_v36 }
  0x1b   : > { %801 = vmatprep.subr.bf16.mxu0 %v835_v3 }
  0x1c   : > { %785 = vmatpush3.bf16.msra.mxu1 %v784_v34 }
  0x1d   : > { %786 = vmatprep.subr.bf16.mxu1 %v835_v3 }
  0x1e   : > { %803 = vmatpush3.bf16.msra.mxu0 %v802_v42 }
  0x1f   : > { %804 = vmatprep.subr.bf16.mxu0 %v835_v3 }
  0x20   : > { %788 = vmatpush3.bf16.msra.mxu1 %v787_v40 }
  0x21   : > { %789 = vmatprep.subr.bf16.mxu1 %v835_v3 }
  0x22   : > { %806 = vmatpush3.bf16.msra.mxu0 %v805_v47 }
  0x23   : > { %807 = vmatprep.subr.bf16.mxu0 %v835_v3 }
  0x24   : > { %791 = vmatpush3.bf16.msra.mxu1 %v790_v46 }
  0x26   : > { %809 = vmatpush3.bf16.msra.mxu0 %v808_v51 }
  0x27   : > { %725 = vmatmul.mubr.f32.vlgmr.msra.gmra.mrb[0].mxu1 %v291_v50  ;;  %810 = vmatprep.subr.bf16.mxu0 %v835_v3 }
  0x2a   : > { %812 = vmatpush3.bf16.msra.mxu0 %v811_v54 }
  0x2b   : > { %813 = vmatprep.subr.bf16.mxu0 %v835_v3  ;;  %v639_v3 = vld [vmem:[%s1044_s6] ss:$0 sm:$0xff] }
  0x2e   : > { %815 = vmatpush3.bf16.msra.mxu0 %v814_v57 }
  0xe4   : > { %v383_v58 = vpop.f32.mrb[0].mxu0 }
  0xe5   : > { %v691_v59 = vpop.f32.mrb[1].mxu0 }
  0xfa   : > { %v453_v60 = vpop.f32.mrb[0].mxu1 }
  0xfb   : > { %v454_v62 = vadd.f32 %v453_v60, %v383_v58  ;;  %v726_v63 = vpop.f32.mrb[1].mxu1 }
  0xfd   : > { %v464_v0 = vadd.f32 %v638_v61, %v454_v62 }
  0xff   : > { %v465_v1 = vmul.f32 0.01, %v464_v0 }
 0x101   : > { %v466_v2 = vmax.f32 %v464_v0, %v465_v1 }
 0x103   : > { %760 = vmatmul.mubr.f32.vlgmr.msra.gmra.mrb[2].mxu0 %v466_v2 }
 0x1d6   : > { %v556_v4 = vpop.f32.mrb[2].mxu0 }
 0x1d7   : > { %v557_v5 = vadd.f32 %v639_v3, %v556_v4  ;;  %v761_v6 = vpop.f32.mrb[3].mxu0 }
 0x1d9   : > { %v560_v7 = vmul.f32 0.01, %v557_v5 }
 0x1db   : > { %v561_v8 = vmax.f32 %v557_v5, %v560_v7 }
 0x1dd   : > { %v562_v9 = vadd.f32 %v561_v8, %v291_v50 }
 0x1df   : > { %563 = vst [vmem:[%s290_s27] sm:$0xff] %v562_v9 }
 0x1e0 PF: > { %s17_s24 = sadd.s32 1, %s833_s24  }
 0x1e1   : > { %p14_p4 = scmp.ge.s32.totalorder %s17_s24, 4  }
 0x1e3   :  { %16 = sbr.rel (!%p14_p4) target bundleno = 1 (0x1), region = 81 }

</bundles_post_ra>
